<compile_context>
chip_gen: v7x
topology: tpu7x:2x2x1
jax: 0.10.0
libtpu: 0.0.40
codegen_flags: <defaults>
</compile_context>

<pallas_src>
import numpy as np
import jax
import jax.numpy as jnp
from jax.experimental import pallas as pl
from jax.experimental.pallas import tpu as pltpu

PAD = 128                                     # lane-padded width of every hidden layer
N_LAYERS = 10
LAYER_SIZES = [20, 30, 50, 100, 100, 50, 50, 50, 10, 1]   # fc1..fc10 output widths


def mlp_kernel(x_ref, w1_ref, w_ref, b_ref, o_ref):
    """One batch tile of the full MLP. Weight stacks are VMEM-resident across the grid."""
    # layer 1: (B_TILE, in) x (in, 128)
    h = jnp.dot(x_ref[...].astype(jnp.bfloat16), w1_ref[...],
                preferred_element_type=jnp.float32) + b_ref[0]
    h = jnp.maximum(h, 0.0)
    # layers 2..10: (B_TILE, 128) x (128, 128), static unroll -> 9 MXU matmuls
    for i in range(N_LAYERS - 1):
        h = jnp.dot(h.astype(jnp.bfloat16), w_ref[i],
                    preferred_element_type=jnp.float32) + b_ref[i + 1]
        if i < N_LAYERS - 2:
            h = jnp.maximum(h, 0.0)                             # ReLU (VPU)
        else:
            h = pl.reciprocal(1.0 + jnp.exp(-h), approx=True)   # sigmoid via EUP exp+vrcp
    o_ref[...] = h[:, :1]                                       # only column 0 is real


def large_nn_forward(x, w1, w_rest, b_stack, *, b_tile=1024):
    """x: (B, input_size) f32. Returns (B, 1) f32 — matches LargeNN.forward."""
    B, in_features = x.shape
    # batch tile: multiple of 8 sublanes, capped at b_tile (fits v5e/v6e/v7x VMEM defaults)
    b_tile = min(int(b_tile), max(8, int(np.ceil(B / 8) * 8)))
    b_tile = int(np.ceil(b_tile / 8) * 8)
    B_pad = int(np.ceil(B / b_tile) * b_tile)

    if B_pad == B:
        x_pad = x.astype(jnp.float32)
    else:
        x_pad = jnp.zeros((B_pad, in_features), jnp.float32).at[:B].set(
            x.astype(jnp.float32))

    out = pl.pallas_call(
        mlp_kernel,
        out_shape=jax.ShapeDtypeStruct((B_pad, 1), jnp.float32),
        grid=(B_pad // b_tile,),
        in_specs=[
            # streamed per-tile
            pl.BlockSpec((b_tile, in_features), lambda i: (i, 0)),
            # weights/biases: constant index_map -> fetched once, VMEM-resident
            pl.BlockSpec((in_features, PAD), lambda i: (0, 0)),
            pl.BlockSpec((N_LAYERS - 1, PAD, PAD), lambda i: (0, 0, 0)),
            pl.BlockSpec((N_LAYERS, 1, PAD), lambda i: (0, 0, 0)),
        ],
        out_specs=pl.BlockSpec((b_tile, 1), lambda i: (i, 0)),
        compiler_params=pltpu.CompilerParams(
            dimension_semantics=("parallel",),      # megacore sharding on v7x
        ),
    )(x_pad, w1, w_rest, b_stack)

    return out[:B]


def init_params(input_size, key):
    """PyTorch-Linear-style init, packed into padded stacks (weights quantized to bf16)."""
    in_dims = [input_size] + LAYER_SIZES[:-1]
    w1 = np.zeros((input_size, PAD), np.float32)
    w_rest = np.zeros((N_LAYERS - 1, PAD, PAD), np.float32)
    b_stack = np.zeros((N_LAYERS, 1, PAD), np.float32)
    ws, bs = [], []
    for i, (din, dout) in enumerate(zip(in_dims, LAYER_SIZES)):
        key, k1, k2 = jax.random.split(key, 3)
        bound = 1.0 / np.sqrt(din)
        w = np.asarray(jax.random.uniform(k1, (din, dout), jnp.float32, -bound, bound))
        b = np.asarray(jax.random.uniform(k2, (dout,), jnp.float32, -bound, bound))
        # quantize weights to bf16 once so kernel and reference use identical weights
        w_q = np.asarray(jnp.asarray(w).astype(jnp.bfloat16).astype(jnp.float32))
        ws.append(w_q)
        bs.append(b)
        if i == 0:
            w1[:din, :dout] = w_q
        else:
            w_rest[i - 1, :din, :dout] = w_q
        b_stack[i, 0, :dout] = b
    return (jnp.asarray(w1, jnp.bfloat16),
            jnp.asarray(w_rest, jnp.bfloat16),
            jnp.asarray(b_stack, jnp.float32),
            ws, bs)


def reference_forward(x, ws, bs):
    h = np.asarray(x, np.float32)
    for i in range(N_LAYERS):
        h = h @ ws[i] + bs[i]
        if i < N_LAYERS - 1:
            h = np.maximum(h, 0.0)
        else:
            h = 1.0 / (1.0 + np.exp(-h))
    return h


if __name__ == "__main__":
    key = jax.random.PRNGKey(0)
    input_size = 16
    batch = 32

    key, kx, kp = jax.random.split(key, 3)
    x = jax.random.normal(kx, (batch, input_size), jnp.float32)

    w1, w_rest, b_stack, ws, bs = init_params(input_size, kp)

    # b_tile=8 -> grid=(4,): exercises the batch tiling / index_maps at small shapes
    out = large_nn_forward(x, w1, w_rest, b_stack, b_tile=8)
    out = jax.block_until_ready(out)

    ref = reference_forward(np.asarray(x), ws, bs)
    assert out.shape == (batch, 1)
    # bf16 activations on the MXU + approx reciprocal -> relaxed tolerance
    np.testing.assert_allclose(np.asarray(out), ref, rtol=2e-2, atol=2e-2)

    print("KERNEL_OK")
</pallas_src>

<mosaic_0001>
module attributes {stable_mosaic.version = 11 : i64} {
  func.func @mlp_kernel(%arg0: i32, %arg1: memref<8x16xf32, #tpu.memory_space<vmem>>, %arg2: memref<16x128xbf16, #tpu.memory_space<vmem>>, %arg3: memref<9x128x128xbf16, #tpu.memory_space<vmem>>, %arg4: memref<10x1x128xf32, #tpu.memory_space<vmem>>, %arg5: memref<8x1xf32, #tpu.memory_space<vmem>>) attributes {dimension_semantics = [#tpu.dimension_semantics<parallel>], iteration_bounds = array<i64: 4>, scalar_prefetch = 0 : i64, scratch_operands = 0 : i64, tpu.core_type = #tpu.core_type<tc>, window_params = [{transform_indices = @transform_0, window_bounds = array<i64: 8, 16>}, {pipeline_mode = #tpu.pipeline_mode<synchronous>, transform_indices = @transform_1, window_bounds = array<i64: 16, 128>}, {pipeline_mode = #tpu.pipeline_mode<synchronous>, transform_indices = @transform_2, window_bounds = array<i64: 9, 128, 128>}, {pipeline_mode = #tpu.pipeline_mode<synchronous>, transform_indices = @transform_3, window_bounds = array<i64: 10, 1, 128>}, {transform_indices = @transform_4, window_bounds = array<i64: 8, 1>}]} {
    %c0 = arith.constant 0 : index
    %c0_0 = arith.constant 0 : index
    %0 = vector.load %arg1[%c0, %c0_0] : memref<8x16xf32, #tpu.memory_space<vmem>>, vector<8x16xf32>
    %1 = arith.truncf %0 : vector<8x16xf32> to vector<8x16xbf16>
    %c0_1 = arith.constant 0 : index
    %c0_2 = arith.constant 0 : index
    %2 = vector.load %arg2[%c0_1, %c0_2] : memref<16x128xbf16, #tpu.memory_space<vmem>>, vector<16x128xbf16>
    %cst = arith.constant dense<0.000000e+00> : vector<8x128xf32>
    %3 = tpu.matmul %1, %2, %cst {dimension_numbers = #tpu.dot_dimension_numbers<[1], [0], [0], [1], [0, 0, 1, 1], [], []>} : vector<8x16xbf16>, vector<16x128xbf16>, vector<8x128xf32> -> vector<8x128xf32>
    %c0_3 = arith.constant 0 : index
    %c0_4 = arith.constant 0 : index
    %c0_5 = arith.constant 0 : index
    %4 = vector.load %arg4[%c0_3, %c0_4, %c0_5] : memref<10x1x128xf32, #tpu.memory_space<vmem>>, vector<1x1x128xf32>
    %5 = vector.shape_cast %4 : vector<1x1x128xf32> to vector<1x128xf32>
    %6 = vector.broadcast %5 : vector<1x128xf32> to vector<8x128xf32>
    %7 = arith.addf %3, %6 : vector<8x128xf32>
    %cst_6 = arith.constant 0.000000e+00 : f32
    %8 = vector.broadcast %cst_6 : f32 to vector<8x128xf32>
    %9 = arith.maximumf %7, %8 : vector<8x128xf32>
    %10 = arith.truncf %9 : vector<8x128xf32> to vector<8x128xbf16>
    %c0_7 = arith.constant 0 : index
    %c0_8 = arith.constant 0 : index
    %c0_9 = arith.constant 0 : index
    %11 = vector.load %arg3[%c0_7, %c0_8, %c0_9] : memref<9x128x128xbf16, #tpu.memory_space<vmem>>, vector<1x128x128xbf16>
    %12 = vector.shape_cast %11 : vector<1x128x128xbf16> to vector<128x128xbf16>
    %cst_10 = arith.constant dense<0.000000e+00> : vector<8x128xf32>
    %13 = tpu.matmul %10, %12, %cst_10 {dimension_numbers = #tpu.dot_dimension_numbers<[1], [0], [0], [1], [0, 0, 1, 1], [], []>} : vector<8x128xbf16>, vector<128x128xbf16>, vector<8x128xf32> -> vector<8x128xf32>
    %c1 = arith.constant 1 : index
    %c0_11 = arith.constant 0 : index
    %c0_12 = arith.constant 0 : index
    %14 = vector.load %arg4[%c1, %c0_11, %c0_12] : memref<10x1x128xf32, #tpu.memory_space<vmem>>, vector<1x1x128xf32>
    %15 = vector.shape_cast %14 : vector<1x1x128xf32> to vector<1x128xf32>
    %16 = vector.broadcast %15 : vector<1x128xf32> to vector<8x128xf32>
    %17 = arith.addf %13, %16 : vector<8x128xf32>
    %cst_13 = arith.constant 0.000000e+00 : f32
    %18 = vector.broadcast %cst_13 : f32 to vector<8x128xf32>
    %19 = arith.maximumf %17, %18 : vector<8x128xf32>
    %20 = arith.truncf %19 : vector<8x128xf32> to vector<8x128xbf16>
    %c1_14 = arith.constant 1 : index
    %c0_15 = arith.constant 0 : index
    %c0_16 = arith.constant 0 : index
    %21 = vector.load %arg3[%c1_14, %c0_15, %c0_16] : memref<9x128x128xbf16, #tpu.memory_space<vmem>>, vector<1x128x128xbf16>
    %22 = vector.shape_cast %21 : vector<1x128x128xbf16> to vector<128x128xbf16>
    %cst_17 = arith.constant dense<0.000000e+00> : vector<8x128xf32>
    %23 = tpu.matmul %20, %22, %cst_17 {dimension_numbers = #tpu.dot_dimension_numbers<[1], [0], [0], [1], [0, 0, 1, 1], [], []>} : vector<8x128xbf16>, vector<128x128xbf16>, vector<8x128xf32> -> vector<8x128xf32>
    %c2 = arith.constant 2 : index
    %c0_18 = arith.constant 0 : index
    %c0_19 = arith.constant 0 : index
    %24 = vector.load %arg4[%c2, %c0_18, %c0_19] : memref<10x1x128xf32, #tpu.memory_space<vmem>>, vector<1x1x128xf32>
    %25 = vector.shape_cast %24 : vector<1x1x128xf32> to vector<1x128xf32>
    %26 = vector.broadcast %25 : vector<1x128xf32> to vector<8x128xf32>
    %27 = arith.addf %23, %26 : vector<8x128xf32>
    %cst_20 = arith.constant 0.000000e+00 : f32
    %28 = vector.broadcast %cst_20 : f32 to vector<8x128xf32>
    %29 = arith.maximumf %27, %28 : vector<8x128xf32>
    %30 = arith.truncf %29 : vector<8x128xf32> to vector<8x128xbf16>
    %c2_21 = arith.constant 2 : index
    %c0_22 = arith.constant 0 : index
    %c0_23 = arith.constant 0 : index
    %31 = vector.load %arg3[%c2_21, %c0_22, %c0_23] : memref<9x128x128xbf16, #tpu.memory_space<vmem>>, vector<1x128x128xbf16>
    %32 = vector.shape_cast %31 : vector<1x128x128xbf16> to vector<128x128xbf16>
    %cst_24 = arith.constant dense<0.000000e+00> : vector<8x128xf32>
    %33 = tpu.matmul %30, %32, %cst_24 {dimension_numbers = #tpu.dot_dimension_numbers<[1], [0], [0], [1], [0, 0, 1, 1], [], []>} : vector<8x128xbf16>, vector<128x128xbf16>, vector<8x128xf32> -> vector<8x128xf32>
    %c3 = arith.constant 3 : index
    %c0_25 = arith.constant 0 : index
    %c0_26 = arith.constant 0 : index
    %34 = vector.load %arg4[%c3, %c0_25, %c0_26] : memref<10x1x128xf32, #tpu.memory_space<vmem>>, vector<1x1x128xf32>
    %35 = vector.shape_cast %34 : vector<1x1x128xf32> to vector<1x128xf32>
    %36 = vector.broadcast %35 : vector<1x128xf32> to vector<8x128xf32>
    %37 = arith.addf %33, %36 : vector<8x128xf32>
    %cst_27 = arith.constant 0.000000e+00 : f32
    %38 = vector.broadcast %cst_27 : f32 to vector<8x128xf32>
    %39 = arith.maximumf %37, %38 : vector<8x128xf32>
    %40 = arith.truncf %39 : vector<8x128xf32> to vector<8x128xbf16>
    %c3_28 = arith.constant 3 : index
    %c0_29 = arith.constant 0 : index
    %c0_30 = arith.constant 0 : index
    %41 = vector.load %arg3[%c3_28, %c0_29, %c0_30] : memref<9x128x128xbf16, #tpu.memory_space<vmem>>, vector<1x128x128xbf16>
    %42 = vector.shape_cast %41 : vector<1x128x128xbf16> to vector<128x128xbf16>
    %cst_31 = arith.constant dense<0.000000e+00> : vector<8x128xf32>
    %43 = tpu.matmul %40, %42, %cst_31 {dimension_numbers = #tpu.dot_dimension_numbers<[1], [0], [0], [1], [0, 0, 1, 1], [], []>} : vector<8x128xbf16>, vector<128x128xbf16>, vector<8x128xf32> -> vector<8x128xf32>
    %c4 = arith.constant 4 : index
    %c0_32 = arith.constant 0 : index
    %c0_33 = arith.constant 0 : index
    %44 = vector.load %arg4[%c4, %c0_32, %c0_33] : memref<10x1x128xf32, #tpu.memory_space<vmem>>, vector<1x1x128xf32>
    %45 = vector.shape_cast %44 : vector<1x1x128xf32> to vector<1x128xf32>
    %46 = vector.broadcast %45 : vector<1x128xf32> to vector<8x128xf32>
    %47 = arith.addf %43, %46 : vector<8x128xf32>
    %cst_34 = arith.constant 0.000000e+00 : f32
    %48 = vector.broadcast %cst_34 : f32 to vector<8x128xf32>
    %49 = arith.maximumf %47, %48 : vector<8x128xf32>
    %50 = arith.truncf %49 : vector<8x128xf32> to vector<8x128xbf16>
    %c4_35 = arith.constant 4 : index
    %c0_36 = arith.constant 0 : index
    %c0_37 = arith.constant 0 : index
    %51 = vector.load %arg3[%c4_35, %c0_36, %c0_37] : memref<9x128x128xbf16, #tpu.memory_space<vmem>>, vector<1x128x128xbf16>
    %52 = vector.shape_cast %51 : vector<1x128x128xbf16> to vector<128x128xbf16>
    %cst_38 = arith.constant dense<0.000000e+00> : vector<8x128xf32>
    %53 = tpu.matmul %50, %52, %cst_38 {dimension_numbers = #tpu.dot_dimension_numbers<[1], [0], [0], [1], [0, 0, 1, 1], [], []>} : vector<8x128xbf16>, vector<128x128xbf16>, vector<8x128xf32> -> vector<8x128xf32>
    %c5 = arith.constant 5 : index
    %c0_39 = arith.constant 0 : index
    %c0_40 = arith.constant 0 : index
    %54 = vector.load %arg4[%c5, %c0_39, %c0_40] : memref<10x1x128xf32, #tpu.memory_space<vmem>>, vector<1x1x128xf32>
    %55 = vector.shape_cast %54 : vector<1x1x128xf32> to vector<1x128xf32>
    %56 = vector.broadcast %55 : vector<1x128xf32> to vector<8x128xf32>
    %57 = arith.addf %53, %56 : vector<8x128xf32>
    %cst_41 = arith.constant 0.000000e+00 : f32
    %58 = vector.broadcast %cst_41 : f32 to vector<8x128xf32>
    %59 = arith.maximumf %57, %58 : vector<8x128xf32>
    %60 = arith.truncf %59 : vector<8x128xf32> to vector<8x128xbf16>
    %c5_42 = arith.constant 5 : index
    %c0_43 = arith.constant 0 : index
    %c0_44 = arith.constant 0 : index
    %61 = vector.load %arg3[%c5_42, %c0_43, %c0_44] : memref<9x128x128xbf16, #tpu.memory_space<vmem>>, vector<1x128x128xbf16>
    %62 = vector.shape_cast %61 : vector<1x128x128xbf16> to vector<128x128xbf16>
    %cst_45 = arith.constant dense<0.000000e+00> : vector<8x128xf32>
    %63 = tpu.matmul %60, %62, %cst_45 {dimension_numbers = #tpu.dot_dimension_numbers<[1], [0], [0], [1], [0, 0, 1, 1], [], []>} : vector<8x128xbf16>, vector<128x128xbf16>, vector<8x128xf32> -> vector<8x128xf32>
    %c6 = arith.constant 6 : index
    %c0_46 = arith.constant 0 : index
    %c0_47 = arith.constant 0 : index
    %64 = vector.load %arg4[%c6, %c0_46, %c0_47] : memref<10x1x128xf32, #tpu.memory_space<vmem>>, vector<1x1x128xf32>
    %65 = vector.shape_cast %64 : vector<1x1x128xf32> to vector<1x128xf32>
    %66 = vector.broadcast %65 : vector<1x128xf32> to vector<8x128xf32>
    %67 = arith.addf %63, %66 : vector<8x128xf32>
    %cst_48 = arith.constant 0.000000e+00 : f32
    %68 = vector.broadcast %cst_48 : f32 to vector<8x128xf32>
    %69 = arith.maximumf %67, %68 : vector<8x128xf32>
    %70 = arith.truncf %69 : vector<8x128xf32> to vector<8x128xbf16>
    %c6_49 = arith.constant 6 : index
    %c0_50 = arith.constant 0 : index
    %c0_51 = arith.constant 0 : index
    %71 = vector.load %arg3[%c6_49, %c0_50, %c0_51] : memref<9x128x128xbf16, #tpu.memory_space<vmem>>, vector<1x128x128xbf16>
    %72 = vector.shape_cast %71 : vector<1x128x128xbf16> to vector<128x128xbf16>
    %cst_52 = arith.constant dense<0.000000e+00> : vector<8x128xf32>
    %73 = tpu.matmul %70, %72, %cst_52 {dimension_numbers = #tpu.dot_dimension_numbers<[1], [0], [0], [1], [0, 0, 1, 1], [], []>} : vector<8x128xbf16>, vector<128x128xbf16>, vector<8x128xf32> -> vector<8x128xf32>
    %c7 = arith.constant 7 : index
    %c0_53 = arith.constant 0 : index
    %c0_54 = arith.constant 0 : index
    %74 = vector.load %arg4[%c7, %c0_53, %c0_54] : memref<10x1x128xf32, #tpu.memory_space<vmem>>, vector<1x1x128xf32>
    %75 = vector.shape_cast %74 : vector<1x1x128xf32> to vector<1x128xf32>
    %76 = vector.broadcast %75 : vector<1x128xf32> to vector<8x128xf32>
    %77 = arith.addf %73, %76 : vector<8x128xf32>
    %cst_55 = arith.constant 0.000000e+00 : f32
    %78 = vector.broadcast %cst_55 : f32 to vector<8x128xf32>
    %79 = arith.maximumf %77, %78 : vector<8x128xf32>
    %80 = arith.truncf %79 : vector<8x128xf32> to vector<8x128xbf16>
    %c7_56 = arith.constant 7 : index
    %c0_57 = arith.constant 0 : index
    %c0_58 = arith.constant 0 : index
    %81 = vector.load %arg3[%c7_56, %c0_57, %c0_58] : memref<9x128x128xbf16, #tpu.memory_space<vmem>>, vector<1x128x128xbf16>
    %82 = vector.shape_cast %81 : vector<1x128x128xbf16> to vector<128x128xbf16>
    %cst_59 = arith.constant dense<0.000000e+00> : vector<8x128xf32>
    %83 = tpu.matmul %80, %82, %cst_59 {dimension_numbers = #tpu.dot_dimension_numbers<[1], [0], [0], [1], [0, 0, 1, 1], [], []>} : vector<8x128xbf16>, vector<128x128xbf16>, vector<8x128xf32> -> vector<8x128xf32>
    %c8 = arith.constant 8 : index
    %c0_60 = arith.constant 0 : index
    %c0_61 = arith.constant 0 : index
    %84 = vector.load %arg4[%c8, %c0_60, %c0_61] : memref<10x1x128xf32, #tpu.memory_space<vmem>>, vector<1x1x128xf32>
    %85 = vector.shape_cast %84 : vector<1x1x128xf32> to vector<1x128xf32>
    %86 = vector.broadcast %85 : vector<1x128xf32> to vector<8x128xf32>
    %87 = arith.addf %83, %86 : vector<8x128xf32>
    %cst_62 = arith.constant 0.000000e+00 : f32
    %88 = vector.broadcast %cst_62 : f32 to vector<8x128xf32>
    %89 = arith.maximumf %87, %88 : vector<8x128xf32>
    %90 = arith.truncf %89 : vector<8x128xf32> to vector<8x128xbf16>
    %c8_63 = arith.constant 8 : index
    %c0_64 = arith.constant 0 : index
    %c0_65 = arith.constant 0 : index
    %91 = vector.load %arg3[%c8_63, %c0_64, %c0_65] : memref<9x128x128xbf16, #tpu.memory_space<vmem>>, vector<1x128x128xbf16>
    %92 = vector.shape_cast %91 : vector<1x128x128xbf16> to vector<128x128xbf16>
    %cst_66 = arith.constant dense<0.000000e+00> : vector<8x128xf32>
    %93 = tpu.matmul %90, %92, %cst_66 {dimension_numbers = #tpu.dot_dimension_numbers<[1], [0], [0], [1], [0, 0, 1, 1], [], []>} : vector<8x128xbf16>, vector<128x128xbf16>, vector<8x128xf32> -> vector<8x128xf32>
    %c9 = arith.constant 9 : index
    %c0_67 = arith.constant 0 : index
    %c0_68 = arith.constant 0 : index
    %94 = vector.load %arg4[%c9, %c0_67, %c0_68] : memref<10x1x128xf32, #tpu.memory_space<vmem>>, vector<1x1x128xf32>
    %95 = vector.shape_cast %94 : vector<1x1x128xf32> to vector<1x128xf32>
    %96 = vector.broadcast %95 : vector<1x128xf32> to vector<8x128xf32>
    %97 = arith.addf %93, %96 : vector<8x128xf32>
    %cst_69 = arith.constant 0.000000e+00 : f32
    %98 = vector.broadcast %cst_69 : f32 to vector<8x128xf32>
    %99 = arith.subf %98, %97 : vector<8x128xf32>
    %100 = math.exp %99 : vector<8x128xf32>
    %cst_70 = arith.constant 1.000000e+00 : f32
    %101 = vector.broadcast %cst_70 : f32 to vector<8x128xf32>
    %102 = arith.addf %101, %100 : vector<8x128xf32>
    %103 = tpu.reciprocal %102 {approx = true} : vector<8x128xf32> -> vector<8x128xf32>
    %104 = vector.extract_strided_slice %103 {offsets = [0, 0], sizes = [8, 1], strides = [1, 1]} : vector<8x128xf32> to vector<8x1xf32>
    %c0_71 = arith.constant 0 : index
    %c0_72 = arith.constant 0 : index
    %105 = vector.load %arg5[%c0_71, %c0_72] : memref<8x1xf32, #tpu.memory_space<vmem>>, vector<8x1xf32>
    tpu.vector_store %arg5[%c0_71, %c0_72], %104 {strides = array<i32>} : memref<8x1xf32, #tpu.memory_space<vmem>>, vector<8x1xf32>,
    return
  }
  func.func @transform_0(%arg0: i32) -> (i32, i32) {
    %c0_i32 = arith.constant 0 : i32
    %c0_i32_0 = arith.constant 0 : i32
    return %arg0, %c0_i32 : i32, i32
  }
  func.func @transform_1(%arg0: i32) -> (i32, i32) {
    %c0_i32 = arith.constant 0 : i32
    %c0_i32_0 = arith.constant 0 : i32
    %c0_i32_1 = arith.constant 0 : i32
    return %c0_i32, %c0_i32_0 : i32, i32
  }
  func.func @transform_2(%arg0: i32) -> (i32, i32, i32) {
    %c0_i32 = arith.constant 0 : i32
    %c0_i32_0 = arith.constant 0 : i32
    %c0_i32_1 = arith.constant 0 : i32
    %c0_i32_2 = arith.constant 0 : i32
    return %c0_i32, %c0_i32_0, %c0_i32_1 : i32, i32, i32
  }
  func.func @transform_3(%arg0: i32) -> (i32, i32, i32) {
    %c0_i32 = arith.constant 0 : i32
    %c0_i32_0 = arith.constant 0 : i32
    %c0_i32_1 = arith.constant 0 : i32
    %c0_i32_2 = arith.constant 0 : i32
    return %c0_i32, %c0_i32_0, %c0_i32_1 : i32, i32, i32
  }
  func.func @transform_4(%arg0: i32) -> (i32, i32) {
    %c0_i32 = arith.constant 0 : i32
    %c0_i32_0 = arith.constant 0 : i32
    return %arg0, %c0_i32 : i32, i32
  }
}

</mosaic_0001>

<bundles_post_ra>
// kernel: tpu_custom_call.1
= control target key start
LH: loop header
LB: loop body
LE: loop exit
PB: predicated region body
PF: predicated region fallthrough
CT: control target
= control target key end

     0   :  { %9 = vsyncpa [#allocation3], 0  ;;  %s1919_s15 = smov 0   ;;  %s2108_s0 = inlined_call_operand.vmem [shape: f32[32,16], index: 0, kind: input, shape index: {}]   ;;  %s2109_s1 = inlined_call_operand.vmem [shape: bf16[16,128], index: 1, kind: input, shape index: {}]   ;;  %s2110_s2 = inlined_call_operand.hbm [shape: bf16[9,128,128], index: 2, kind: input, shape index: {}]   ;;  %s2111_s3 = inlined_call_operand.vmem [shape: f32[10,1,128], index: 3, kind: input, shape index: {}]   ;;  %s2112_s4 = inlined_call_operand.vmem [shape: f32[32,1], index: 4, kind: output, shape index: {}]  }
   0x1 LB: > { %s1925_s16 = sadd.s32 4294967295, %s1887_s15   ;;  %p1378_p0 = scmp.ge.s32.totalorder %s1887_s15, 1  ;;  %s1887_s15 = sphi %s1919_s15, %s15_s15  }
   0x2   : > { %p135_p1 = scmp.lt.s32.totalorder %s1887_s15, 5  ;;  %s1889_s17 = smov [#allocation2]  }
   0x3   : > { %s150_s18 = sshll.u32 %s1889_s17, 4  ;;  %p2113_p3 = scmp.eq.s32.totalorder %s1925_s16, 0  ;;  %s151_s18 = int_to_ptr.vmem [resolvable:$true] %s150_s18 }
   0x4   : > { %p1929_p2 = pnand %p1378_p0, %p135_p1  ;;  %s1849_s23 = scalar_lea.hbm %s2110_s2, 9216 }
   0x5   : > { %p1850_p6 = scmp.ne.s32.totalorder %s2110_s2, %s1849_s23  ;;  %p1856_p10 = scmp.lt.u32.totalorder %s1849_s23, %s2110_s2 }
   0x6   : > { %s2115_s19 = scalar_select %p1929_p2, 1, 0 }
   0x7   : > { %p1753_p4 = pneg %p1929_p2 }
   0x9   : > { %p1938_p5 = pnand %p2113_p3, %p1753_p4 }
   0xb   : > { %p1851_p7 = pneg %p1938_p5 }
   0xd   : > { %p1852_p8 = pnand %p1851_p7, %p1850_p6 }
   0xf   : > { %p1853_p9 = pneg %p1852_p8 }
  0x11   : > { %p1858_p11 = pnand %p1856_p10, %p1853_p9 }
  0x13   : > { %1861 = shalt.err (!%p1858_p11)
}
  0x14   : > { %s1862_s28 = scalar_lea.vmem %s151_s18, 9216  ;;  %p1870_p1 = scmp.lt.s32.totalorder %s151_s18, %s151_s18 }
  0x15   : > { %p1863_p12 = scmp.ne.s32.totalorder %s151_s18, %s1862_s28  ;;  %p1871_p4 = scmp.lt.s32.totalorder %s1862_s28, %s1862_s28 }
  0x17   : > { %p1865_p13 = pnand %p1863_p12, %p1851_p7  ;;  %p1872_p3 = por %p1871_p4, %p1870_p1 }
  0x19   : > { %p1866_p0 = pneg %p1865_p13 }
  0x1b   : > { %p1873_p2 = pnand %p1872_p3, %p1866_p0 }
  0x1d   : > { %1876 = shalt.err (!%p1873_p2)
}
  0x1e   : > { %s1890_s29 = smov 64   ;;  %s1891_s30 = smov 4  }
  0x1f   : > { %1756 = dma.hbm_to_vmem [thread:$0]  (!%p1938_p5), %s2110_s2, 9216, %s151_s18, [#allocation3], %s1890_s29, %s1890_s29, %s1891_s30  }
  0x20   : > { %p2117_p6 = scmp.ne.s32.totalorder %s2115_s19, 0 }
  0x21   : > { %p2118_p8 = scmp.eq.s32.totalorder (!%p2117_p6), %s1925_s16, 0 }
  0x22   : > { %176 = sbr.rel (%p2117_p6) target bundleno = 2255 (0x8cf), region = 36 }
  0x29   : > { %1882 = dma.done.wait (%p2118_p8), [#allocation3], 9216   ;;  %p2119_p7 = pmov %p2118_p8 }
  0x2a   : > { %p200_p2 = scmp.lt.s32.totalorder %s1925_s16, 3  ;;  %v1892_v0 = vmov 0.0   ;;  %vm1893_vm0 = vmmov 0   ;;  %v1772_v1 = vld [vmem:[%s2109_s1] sm:$0xff]   ;;  %vm226_vm1 = vcmask 130048   ;;  %v1774_v5 = vld [vmem:[#allocation2 + $0x8] sm:$0xff]  }
  0x2b   : > { %1884 = vsyncadd (%p2119_p7), [#allocation3], 4294958080  ;;  %1563 = vmatprep.subr.bf16.mxu0 %v1892_v0  ;;  %1565 = vmatprep.mubr.msk.bf16.mxu0 %vm1893_vm0, %v1892_v0  ;;  %v1773_v4 = vld [vmem:[#allocation2] sm:$0xff]   ;;  %v1775_v6 = vld [vmem:[#allocation2 + $0x10] sm:$0xff]   ;;  %vm1309_vm2 = vcmask 7168  }
  0x2c   : > { %s2121_s16 = smov (!%p200_p2, %s1925_s16), 3  ;;  %1569 = vmatprep.subr.bf16.mxu1 %v1892_v0  ;;  %1585 = vmatprep.mubr.msk.bf16.mxu1 %vm1893_vm0, %v1892_v0  ;;  %v1776_v7 = vld [vmem:[#allocation2 + $0x18] sm:$0xff]   ;;  %v1777_v8 = vld [vmem:[#allocation2 + $0x20] sm:$0xff]   ;;  %v1778_v9 = vld [vmem:[#allocation2 + $0x28] sm:$0xff]  }
  0x2d   : > { %s1383_s7 = sshll.u32 %s2121_s16, 3  ;;  %1564 = vmatpush3.bf16.msra.mxu0 %v1772_v1  ;;  %1570 = vmatpush3.bf16.msra.mxu1 %v1773_v4  ;;  %v1779_v10 = vld [vmem:[#allocation2 + $0x30] sm:$0xff]   ;;  %v1780_v11 = vld [vmem:[#allocation2 + $0x38] sm:$0xff]   ;;  %v1781_v12 = vld [vmem:[#allocation2 + $0x40] sm:$0xff]  }
  0x2e   : > { %s203_s10 = scalar_lea.vmem %s2108_s0, %s1383_s7  ;;  %1589 = vmatprep.subr.bf16.mxu0 %v1892_v0  ;;  %1571 = vmatprep.subr.bf16.mxu1 %v1892_v0  ;;  %v1782_v13 = vld [vmem:[#allocation2 + $0x48] sm:$0xff]   ;;  %v1783_v14 = vld [vmem:[#allocation2 + $0x50] sm:$0xff]   ;;  %v1784_v15 = vld [vmem:[#allocation2 + $0x58] sm:$0xff]   ;;  %s207_s12 = scalar_lea.vmem %s2112_s4, %s1383_s7 }
  0x2f   : > { %v209_v2 = vld [vmem:[%s203_s10] sm:$0xff]  ;;  %v1786_v17 = vld [vmem:[#allocation2 + $0x68] sm:$0xff]   ;;  %v1787_v26 = vld [vmem:[#allocation2 + $0x70] sm:$0xff]  }
  0x30   : > { %v210_v3 = vpack.c.bf16 %v209_v2, %v209_v2  ;;  %v1785_v16 = vld [vmem:[#allocation2 + $0x60] sm:$0xff]   ;;  %v1788_v27 = vld [vmem:[#allocation2 + $0x78] sm:$0xff]   ;;  %v1790_v29 = vld [vmem:[#allocation2 + $0x88] sm:$0xff]  }
  0x31   : > { %1572 = vmatpush3.bf16.msra.mxu1 %v1774_v5  ;;  %v1385_v18 = vld [vmem:[%s2111_s3] ss:$0 sm:$0xff]  ;;  %v1791_v30 = vld [vmem:[#allocation2 + $0x90] sm:$0xff]   ;;  %v1792_v31 = vld [vmem:[#allocation2 + $0x98] sm:$0xff]  }
  0x32   : > { %1566 = vmatmul.mubr.msk.bf16.vlgmr.msra.gmra.mrb[0].mxu0 %vm226_vm1, %v210_v3  ;;  %1573 = vmatprep.subr.bf16.mxu1 %v1892_v0  ;;  %v1789_v28 = vld [vmem:[#allocation2 + $0x80] sm:$0xff]   ;;  %v1794_v33 = vld [vmem:[#allocation2 + $0xa8] sm:$0xff]   ;;  %v1795_v42 = vld [vmem:[#allocation2 + $0xb0] sm:$0xff]  }
  0x33   : > { %1605 = vmatprep.mubr.msk.bf16.mxu0 %vm1893_vm0, %v1892_v0  ;;  %1590 = vmatpush3.bf16.msra.mxu0 %v1781_v12  ;;  %v1793_v32 = vld [vmem:[#allocation2 + $0xa0] sm:$0xff]   ;;  %v1796_v43 = vld [vmem:[#allocation2 + $0xb8] sm:$0xff]   ;;  %v1798_v45 = vld [vmem:[#allocation2 + $0xc8] sm:$0xff]  }
  0x34   : > { %1591 = vmatprep.subr.bf16.mxu0 %v1892_v0  ;;  %v1389_v34 = vld [vmem:[%s2111_s3 + $0x1] ss:$0 sm:$0xff]  ;;  %v1799_v46 = vld [vmem:[#allocation2 + $0xd0] sm:$0xff]   ;;  %v1800_v47 = vld [vmem:[#allocation2 + $0xd8] sm:$0xff]  }
  0x35   : > { %1574 = vmatpush3.bf16.msra.mxu1 %v1775_v6  ;;  %v1797_v44 = vld [vmem:[#allocation2 + $0xc0] sm:$0xff]   ;;  %v1802_v49 = vld [vmem:[#allocation2 + $0xe8] sm:$0xff]   ;;  %v1803_v58 = vld [vmem:[#allocation2 + $0xf0] sm:$0xff]  }
  0x36   : > { %1575 = vmatprep.subr.bf16.mxu1 %v1892_v0  ;;  %v1801_v48 = vld [vmem:[#allocation2 + $0xe0] sm:$0xff]   ;;  %v1804_v59 = vld [vmem:[#allocation2 + $0xf8] sm:$0xff]   ;;  %v1806_v61 = vld [vmem:[#allocation2 + $0x108] sm:$0xff]  }
  0x37   : > { %1592 = vmatpush3.bf16.msra.mxu0 %v1782_v13  ;;  %v1399_v50 = vld [vmem:[%s2111_s3 + $0x2] ss:$0 sm:$0xff]  ;;  %v1807_v62 = vld [vmem:[#allocation2 + $0x110] sm:$0xff]   ;;  %v1808_v63 = vld [vmem:[#allocation2 + $0x118] sm:$0xff]  }
  0x38   : > { %1593 = vmatprep.subr.bf16.mxu0 %v1892_v0  ;;  %v1805_v60 = vld [vmem:[#allocation2 + $0x100] sm:$0xff]   ;;  %v1810_v2 = vld [vmem:[#allocation2 + $0x128] sm:$0xff]   ;;  %v1812_v12 = vld [vmem:[#allocation2 + $0x138] sm:$0xff]  }
  0x39   : > { %1576 = vmatpush3.bf16.msra.mxu1 %v1776_v7  ;;  %v1809_v1 = vld [vmem:[#allocation2 + $0x120] sm:$0xff]  }
  0x3a   : > { %1577 = vmatprep.subr.bf16.mxu1 %v1892_v0  ;;  %v1409_v3 = vld [vmem:[%s2111_s3 + $0x3] ss:$0 sm:$0xff] }
  0x3b   : > { %1594 = vmatpush3.bf16.msra.mxu0 %v1783_v14  ;;  %v1813_v13 = vld [vmem:[#allocation2 + $0x140] sm:$0xff]   ;;  %v1814_v14 = vld [vmem:[#allocation2 + $0x148] sm:$0xff]  }
  0x3c   : > { %1595 = vmatprep.subr.bf16.mxu0 %v1892_v0 }
  0x3d   : > { %1578 = vmatpush3.bf16.msra.mxu1 %v1777_v8 }
  0x3e   : > { %1579 = vmatprep.subr.bf16.mxu1 %v1892_v0 }
  0x3f   : > { %1596 = vmatpush3.bf16.msra.mxu0 %v1784_v15  ;;  %v1815_v15 = vld [vmem:[#allocation2 + $0x150] sm:$0xff]  }
  0x40   : > { %1597 = vmatprep.subr.bf16.mxu0 %v1892_v0 }
  0x41   : > { %1580 = vmatpush3.bf16.msra.mxu1 %v1778_v9 }
  0x42   : > { %1581 = vmatprep.subr.bf16.mxu1 %v1892_v0 }
  0x43   : > { %1598 = vmatpush3.bf16.msra.mxu0 %v1785_v16  ;;  %v1816_v16 = vld [vmem:[#allocation2 + $0x158] sm:$0xff]  }
  0x44   : > { %1599 = vmatprep.subr.bf16.mxu0 %v1892_v0 }
  0x45   : > { %1582 = vmatpush3.bf16.msra.mxu1 %v1779_v10 }
  0x46   : > { %1583 = vmatprep.subr.bf16.mxu1 %v1892_v0 }
  0x47   : > { %1600 = vmatpush3.bf16.msra.mxu0 %v1786_v17  ;;  %v1817_v17 = vld [vmem:[#allocation2 + $0x160] sm:$0xff]  }
  0x48   : > { %1601 = vmatprep.subr.bf16.mxu0 %v1892_v0 }
  0x49   : > { %1584 = vmatpush3.bf16.msra.mxu1 %v1780_v11  ;;  %v1811_v11 = vld [vmem:[#allocation2 + $0x130] sm:$0xff]  }
  0x4a   : > { %1609 = vmatprep.subr.bf16.mxu1 %v1892_v0 }
  0x4b   : > { %1602 = vmatpush3.bf16.msra.mxu0 %v1787_v26 }
  0x4c   : > { %1603 = vmatprep.subr.bf16.mxu0 %v1892_v0 }
  0x4f   : > { %1604 = vmatpush3.bf16.msra.mxu0 %v1788_v27  ;;  %v1819_v27 = vld [vmem:[#allocation2 + $0x170] sm:$0xff]  }
  0x50   : > { %1629 = vmatprep.subr.bf16.mxu0 %v1892_v0 }
 0x105   : > { %v264_v19 = vpop.f32.mrb[0].mxu0 }
 0x106   : > { %v265_v20 = vadd.f32 %v1385_v18, %v264_v19  ;;  %v1567_v21 = vpop.f32.mrb[1].mxu0  ;;  %v1818_v18 = vld [vmem:[#allocation2 + $0x168] sm:$0xff]   ;;  %v1419_v19 = vld [vmem:[%s2111_s3 + $0x4] ss:$0 sm:$0xff] }
 0x107   : > { %v267_v22 = vpop.f32.mrb[2].mxu0 }
 0x108   : > { %v270_v23 = vmax.f32 %v265_v20, 0.0  ;;  %v1568_v24 = vpop.f32.mrb[3].mxu0 }
 0x10a   : > { %v271_v25 = vpack.c.bf16 %v270_v23, %v270_v23 }
 0x10c   : > { %1586 = vmatmul.mubr.bf16.vlgmr.msra.gmra.mrb[0].mxu1 %v271_v25 }
 0x10d   : > { %1625 = vmatprep.mubr.msk.bf16.mxu1 %vm1893_vm0, %v1892_v0  ;;  %1610 = vmatpush3.bf16.msra.mxu1 %v1789_v28  ;;  %v1820_v28 = vld [vmem:[#allocation2 + $0x178] sm:$0xff]  }
 0x10e   : > { %1611 = vmatprep.subr.bf16.mxu1 %v1892_v0 }
 0x111   : > { %1612 = vmatpush3.bf16.msra.mxu1 %v1790_v29  ;;  %v1821_v29 = vld [vmem:[#allocation2 + $0x180] sm:$0xff]  }
 0x112   : > { %1613 = vmatprep.subr.bf16.mxu1 %v1892_v0 }
 0x115   : > { %1614 = vmatpush3.bf16.msra.mxu1 %v1791_v30  ;;  %v1822_v30 = vld [vmem:[#allocation2 + $0x188] sm:$0xff]  }
 0x116   : > { %1615 = vmatprep.subr.bf16.mxu1 %v1892_v0 }
 0x119   : > { %1616 = vmatpush3.bf16.msra.mxu1 %v1792_v31  ;;  %v1823_v31 = vld [vmem:[#allocation2 + $0x190] sm:$0xff]  }
 0x11a   : > { %1617 = vmatprep.subr.bf16.mxu1 %v1892_v0 }
 0x11d   : > { %1618 = vmatpush3.bf16.msra.mxu1 %v1793_v32  ;;  %v1824_v32 = vld [vmem:[#allocation2 + $0x198] sm:$0xff]  }
 0x11e   : > { %1619 = vmatprep.subr.bf16.mxu1 %v1892_v0 }
 0x121   : > { %1620 = vmatpush3.bf16.msra.mxu1 %v1794_v33  ;;  %v1825_v33 = vld [vmem:[#allocation2 + $0x1a0] sm:$0xff]  }
 0x122   : > { %1621 = vmatprep.subr.bf16.mxu1 %v1892_v0 }
 0x125   : > { %1622 = vmatpush3.bf16.msra.mxu1 %v1795_v42 }
 0x126   : > { %1623 = vmatprep.subr.bf16.mxu1 %v1892_v0 }
 0x129   : > { %1624 = vmatpush3.bf16.msra.mxu1 %v1796_v43  ;;  %v1827_v43 = vld [vmem:[#allocation2 + $0x1b0] sm:$0xff]  }
 0x12a   : > { %1649 = vmatprep.subr.bf16.mxu1 %v1892_v0 }
 0x1df   : > { %v378_v35 = vpop.f32.mrb[0].mxu1 }
 0x1e0   : > { %v379_v36 = vadd.f32 %v1389_v34, %v378_v35  ;;  %v1587_v37 = vpop.f32.mrb[1].mxu1  ;;  %v1826_v34 = vld [vmem:[#allocation2 + $0x1a8] sm:$0xff]   ;;  %v1429_v35 = vld [vmem:[%s2111_s3 + $0x5] ss:$0 sm:$0xff] }
 0x1e1   : > { %v381_v38 = vpop.f32.mrb[2].mxu1 }
 0x1e2   : > { %v384_v39 = vmax.f32 %v379_v36, 0.0  ;;  %v1588_v40 = vpop.f32.mrb[3].mxu1 }
 0x1e4   : > { %v385_v41 = vpack.c.bf16 %v384_v39, %v384_v39 }
 0x1e6   : > { %1606 = vmatmul.mubr.bf16.vlgmr.msra.gmra.mrb[4].mxu0 %v385_v41 }
 0x1e7   : > { %1645 = vmatprep.mubr.msk.bf16.mxu0 %vm1893_vm0, %v1892_v0  ;;  %1630 = vmatpush3.bf16.msra.mxu0 %v1797_v44  ;;  %v1828_v44 = vld [vmem:[#allocation2 + $0x1b8] sm:$0xff]  }
 0x1e8   : > { %1631 = vmatprep.subr.bf16.mxu0 %v1892_v0 }
 0x1eb   : > { %1632 = vmatpush3.bf16.msra.mxu0 %v1798_v45  ;;  %v1829_v45 = vld [vmem:[#allocation2 + $0x1c0] sm:$0xff]  }
 0x1ec   : > { %1633 = vmatprep.subr.bf16.mxu0 %v1892_v0 }
 0x1ef   : > { %1634 = vmatpush3.bf16.msra.mxu0 %v1799_v46  ;;  %v1830_v46 = vld [vmem:[#allocation2 + $0x1c8] sm:$0xff]  }
 0x1f0   : > { %1635 = vmatprep.subr.bf16.mxu0 %v1892_v0 }
 0x1f3   : > { %1636 = vmatpush3.bf16.msra.mxu0 %v1800_v47  ;;  %v1831_v47 = vld [vmem:[#allocation2 + $0x1d0] sm:$0xff]  }
 0x1f4   : > { %1637 = vmatprep.subr.bf16.mxu0 %v1892_v0 }
 0x1f7   : > { %1638 = vmatpush3.bf16.msra.mxu0 %v1801_v48  ;;  %v1832_v48 = vld [vmem:[#allocation2 + $0x1d8] sm:$0xff]  }
 0x1f8   : > { %1639 = vmatprep.subr.bf16.mxu0 %v1892_v0 }
 0x1fb   : > { %1640 = vmatpush3.bf16.msra.mxu0 %v1802_v49  ;;  %v1833_v49 = vld [vmem:[#allocation2 + $0x1e0] sm:$0xff]  }
 0x1fc   : > { %1641 = vmatprep.subr.bf16.mxu0 %v1892_v0 }
 0x1ff   : > { %1642 = vmatpush3.bf16.msra.mxu0 %v1803_v58 }
 0x200   : > { %1643 = vmatprep.subr.bf16.mxu0 %v1892_v0 }
 0x203   : > { %1644 = vmatpush3.bf16.msra.mxu0 %v1804_v59  ;;  %v1835_v59 = vld [vmem:[#allocation2 + $0x1f0] sm:$0xff]  }
 0x204   : > { %1669 = vmatprep.subr.bf16.mxu0 %v1892_v0 }
 0x2b9   : > { %v493_v51 = vpop.f32.mrb[4].mxu0 }
 0x2ba   : > { %v494_v52 = vadd.f32 %v1399_v50, %v493_v51  ;;  %v1607_v53 = vpop.f32.mrb[5].mxu0  ;;  %v1834_v50 = vld [vmem:[#allocation2 + $0x1e8] sm:$0xff]   ;;  %v1439_v51 = vld [vmem:[%s2111_s3 + $0x6] ss:$0 sm:$0xff] }
 0x2bb   : > { %v496_v54 = vpop.f32.mrb[6].mxu0 }
 0x2bc   : > { %v499_v55 = vmax.f32 %v494_v52, 0.0  ;;  %v1608_v56 = vpop.f32.mrb[7].mxu0 }
 0x2be   : > { %v500_v57 = vpack.c.bf16 %v499_v55, %v499_v55 }
 0x2c0   : > { %1626 = vmatmul.mubr.bf16.vlgmr.msra.gmra.mrb[4].mxu1 %v500_v57 }
 0x2c1   : > { %1665 = vmatprep.mubr.msk.bf16.mxu1 %vm1893_vm0, %v1892_v0  ;;  %1650 = vmatpush3.bf16.msra.mxu1 %v1805_v60  ;;  %v1836_v60 = vld [vmem:[#allocation2 + $0x1f8] sm:$0xff]  }
 0x2c2   : > { %1651 = vmatprep.subr.bf16.mxu1 %v1892_v0 }
 0x2c5   : > { %1652 = vmatpush3.bf16.msra.mxu1 %v1806_v61  ;;  %v1837_v61 = vld [vmem:[#allocation2 + $0x200] sm:$0xff]  }
 0x2c6   : > { %1653 = vmatprep.subr.bf16.mxu1 %v1892_v0 }
 0x2c9   : > { %1654 = vmatpush3.bf16.msra.mxu1 %v1807_v62  ;;  %v1838_v62 = vld [vmem:[#allocation2 + $0x208] sm:$0xff]  }
 0x2ca   : > { %1655 = vmatprep.subr.bf16.mxu1 %v1892_v0 }
 0x2cd   : > { %1656 = vmatpush3.bf16.msra.mxu1 %v1808_v63  ;;  %v1839_v63 = vld [vmem:[#allocation2 + $0x210] sm:$0xff]  }
 0x2ce   : > { %1657 = vmatprep.subr.bf16.mxu1 %v1892_v0 }
 0x2d1   : > { %1658 = vmatpush3.bf16.msra.mxu1 %v1809_v1  ;;  %v1840_v1 = vld [vmem:[#allocation2 + $0x218] sm:$0xff]  }
 0x2d2   : > { %1659 = vmatprep.subr.bf16.mxu1 %v1892_v0 }
 0x2d5   : > { %1660 = vmatpush3.bf16.msra.mxu1 %v1810_v2  ;;  %v1841_v2 = vld [vmem:[#allocation2 + $0x220] sm:$0xff]  }
 0x2d6   : > { %1661 = vmatprep.subr.bf16.mxu1 %v1892_v0 }
 0x2d9   : > { %1662 = vmatpush3.bf16.msra.mxu1 %v1811_v11 }
 0x2da   : > { %1663 = vmatprep.subr.bf16.mxu1 %v1892_v0 }
 0x2dd   : > { %1664 = vmatpush3.bf16.msra.mxu1 %v1812_v12  ;;  %v1843_v12 = vld [vmem:[#allocation2 + $0x230] sm:$0xff]  }
 0x2de   : > { %1689 = vmatprep.subr.bf16.mxu1 %v1892_v0 }
 0x393   : > { %v608_v4 = vpop.f32.mrb[4].mxu1 }
 0x394   : > { %v609_v5 = vadd.f32 %v1409_v3, %v608_v4  ;;  %v1627_v6 = vpop.f32.mrb[5].mxu1  ;;  %v1842_v3 = vld [vmem:[#allocation2 + $0x228] sm:$0xff]   ;;  %v1449_v4 = vld [vmem:[%s2111_s3 + $0x7] ss:$0 sm:$0xff] }
 0x395   : > { %v611_v7 = vpop.f32.mrb[6].mxu1 }
 0x396   : > { %v614_v8 = vmax.f32 %v609_v5, 0.0  ;;  %v1628_v9 = vpop.f32.mrb[7].mxu1 }
 0x398   : > { %v615_v10 = vpack.c.bf16 %v614_v8, %v614_v8 }
 0x39a   : > { %1646 = vmatmul.mubr.bf16.vlgmr.msra.gmra.mrb[8].mxu0 %v615_v10 }
 0x39b   : > { %1685 = vmatprep.mubr.msk.bf16.mxu0 %vm1893_vm0, %v1892_v0  ;;  %1670 = vmatpush3.bf16.msra.mxu0 %v1813_v13  ;;  %v1844_v13 = vld [vmem:[#allocation2 + $0x238] sm:$0xff]  }
 0x39c   : > { %1671 = vmatprep.subr.bf16.mxu0 %v1892_v0 }
 0x39f   : > { %1672 = vmatpush3.bf16.msra.mxu0 %v1814_v14  ;;  %v1459_v14 = vld [vmem:[%s2111_s3 + $0x8] ss:$0 sm:$0xff] }
 0x3a0   : > { %1673 = vmatprep.subr.bf16.mxu0 %v1892_v0 }
 0x3a3   : > { %1674 = vmatpush3.bf16.msra.mxu0 %v1815_v15 }
 0x3a4   : > { %1675 = vmatprep.subr.bf16.mxu0 %v1892_v0 }
 0x3a7   : > { %1676 = vmatpush3.bf16.msra.mxu0 %v1816_v16 }
 0x3a8   : > { %1677 = vmatprep.subr.bf16.mxu0 %v1892_v0 }
 0x3ab   : > { %1678 = vmatpush3.bf16.msra.mxu0 %v1817_v17 }
 0x3ac   : > { %1679 = vmatprep.subr.bf16.mxu0 %v1892_v0 }
 0x3af   : > { %1680 = vmatpush3.bf16.msra.mxu0 %v1818_v18 }
 0x3b0   : > { %1681 = vmatprep.subr.bf16.mxu0 %v1892_v0 }
 0x3b3   : > { %1682 = vmatpush3.bf16.msra.mxu0 %v1819_v27 }
 0x3b4   : > { %1683 = vmatprep.subr.bf16.mxu0 %v1892_v0 }
 0x3b7   : > { %1684 = vmatpush3.bf16.msra.mxu0 %v1820_v28 }
 0x3b8   : > { %1709 = vmatprep.subr.bf16.mxu0 %v1892_v0 }
 0x46d   : > { %v723_v20 = vpop.f32.mrb[8].mxu0 }
 0x46e   : > { %v724_v21 = vadd.f32 %v1419_v19, %v723_v20  ;;  %v1647_v22 = vpop.f32.mrb[9].mxu0 }
 0x46f   : > { %v726_v23 = vpop.f32.mrb[10].mxu0  ;;  %v1469_v22 = vld [vmem:[%s2111_s3 + $0x9] ss:$0 sm:$0xff] }
 0x470   : > { %v729_v24 = vmax.f32 %v724_v21, 0.0  ;;  %v1648_v25 = vpop.f32.mrb[11].mxu0 }
 0x472   : > { %v730_v26 = vpack.c.bf16 %v729_v24, %v729_v24 }
 0x474   : > { %1666 = vmatmul.mubr.bf16.vlgmr.msra.gmra.mrb[8].mxu1 %v730_v26 }
 0x475   : > { %1705 = vmatprep.mubr.msk.bf16.mxu1 %vm1893_vm0, %v1892_v0  ;;  %1690 = vmatpush3.bf16.msra.mxu1 %v1821_v29 }
 0x476   : > { %1691 = vmatprep.subr.bf16.mxu1 %v1892_v0 }
 0x479   : > { %1692 = vmatpush3.bf16.msra.mxu1 %v1822_v30 }
 0x47a   : > { %1693 = vmatprep.subr.bf16.mxu1 %v1892_v0 }
 0x47d   : > { %1694 = vmatpush3.bf16.msra.mxu1 %v1823_v31 }
 0x47e   : > { %1695 = vmatprep.subr.bf16.mxu1 %v1892_v0 }
 0x481   : > { %1696 = vmatpush3.bf16.msra.mxu1 %v1824_v32 }
 0x482   : > { %1697 = vmatprep.subr.bf16.mxu1 %v1892_v0 }
 0x485   : > { %1698 = vmatpush3.bf16.msra.mxu1 %v1825_v33 }
 0x486   : > { %1699 = vmatprep.subr.bf16.mxu1 %v1892_v0 }
 0x489   : > { %1700 = vmatpush3.bf16.msra.mxu1 %v1826_v34 }
 0x48a   : > { %1701 = vmatprep.subr.bf16.mxu1 %v1892_v0 }
 0x48d   : > { %1702 = vmatpush3.bf16.msra.mxu1 %v1827_v43 }
 0x48e   : > { %1703 = vmatprep.subr.bf16.mxu1 %v1892_v0 }
 0x491   : > { %1704 = vmatpush3.bf16.msra.mxu1 %v1828_v44 }
 0x492   : > { %1729 = vmatprep.subr.bf16.mxu1 %v1892_v0 }
 0x547   : > { %v838_v36 = vpop.f32.mrb[8].mxu1 }
 0x548   : > { %v839_v37 = vadd.f32 %v1429_v35, %v838_v36  ;;  %v1667_v38 = vpop.f32.mrb[9].mxu1 }
 0x549   : > { %v841_v39 = vpop.f32.mrb[10].mxu1 }
 0x54a   : > { %v844_v40 = vmax.f32 %v839_v37, 0.0  ;;  %v1668_v41 = vpop.f32.mrb[11].mxu1 }
 0x54c   : > { %v845_v42 = vpack.c.bf16 %v844_v40, %v844_v40 }
 0x54e   : > { %1686 = vmatmul.mubr.bf16.vlgmr.msra.gmra.mrb[12].mxu0 %v845_v42 }
 0x54f   : > { %1725 = vmatprep.mubr.msk.bf16.mxu0 %vm1893_vm0, %v1892_v0  ;;  %1710 = vmatpush3.bf16.msra.mxu0 %v1829_v45 }
 0x550   : > { %1711 = vmatprep.subr.bf16.mxu0 %v1892_v0 }
 0x553   : > { %1712 = vmatpush3.bf16.msra.mxu0 %v1830_v46 }
 0x554   : > { %1713 = vmatprep.subr.bf16.mxu0 %v1892_v0 }
 0x557   : > { %1714 = vmatpush3.bf16.msra.mxu0 %v1831_v47 }
 0x558   : > { %1715 = vmatprep.subr.bf16.mxu0 %v1892_v0 }
 0x55b   : > { %1716 = vmatpush3.bf16.msra.mxu0 %v1832_v48 }
 0x55c   : > { %1717 = vmatprep.subr.bf16.mxu0 %v1892_v0 }
 0x55f   : > { %1718 = vmatpush3.bf16.msra.mxu0 %v1833_v49 }
 0x560   : > { %1719 = vmatprep.subr.bf16.mxu0 %v1892_v0 }
 0x563   : > { %1720 = vmatpush3.bf16.msra.mxu0 %v1834_v50 }
 0x564   : > { %1721 = vmatprep.subr.bf16.mxu0 %v1892_v0 }
 0x567   : > { %1722 = vmatpush3.bf16.msra.mxu0 %v1835_v59 }
 0x568   : > { %1723 = vmatprep.subr.bf16.mxu0 %v1892_v0 }
 0x56b   : > { %1724 = vmatpush3.bf16.msra.mxu0 %v1836_v60 }
 0x621   : > { %v953_v52 = vpop.f32.mrb[12].mxu0 }
 0x622   : > { %v954_v53 = vadd.f32 %v1439_v51, %v953_v52  ;;  %v1687_v54 = vpop.f32.mrb[13].mxu0 }
 0x623   : > { %v956_v55 = vpop.f32.mrb[14].mxu0 }
 0x624   : > { %v959_v56 = vmax.f32 %v954_v53, 0.0  ;;  %v1688_v57 = vpop.f32.mrb[15].mxu0 }
 0x626   : > { %v960_v58 = vpack.c.bf16 %v959_v56, %v959_v56 }
 0x628   : > { %1706 = vmatmul.mubr.bf16.vlgmr.msra.gmra.mrb[12].mxu1 %v960_v58 }
 0x629   : > { %1745 = vmatprep.mubr.msk.bf16.mxu1 %vm1893_vm0, %v1892_v0  ;;  %1730 = vmatpush3.bf16.msra.mxu1 %v1837_v61 }
 0x62a   : > { %1731 = vmatprep.subr.bf16.mxu1 %v1892_v0 }
 0x62d   : > { %1732 = vmatpush3.bf16.msra.mxu1 %v1838_v62 }
 0x62e   : > { %1733 = vmatprep.subr.bf16.mxu1 %v1892_v0 }
 0x631   : > { %1734 = vmatpush3.bf16.msra.mxu1 %v1839_v63 }
 0x632   : > { %1735 = vmatprep.subr.bf16.mxu1 %v1892_v0 }
 0x635   : > { %1736 = vmatpush3.bf16.msra.mxu1 %v1840_v1 }
 0x636   : > { %1737 = vmatprep.subr.bf16.mxu1 %v1892_v0 }
 0x639   : > { %1738 = vmatpush3.bf16.msra.mxu1 %v1841_v2 }
 0x63a   : > { %1739 = vmatprep.subr.bf16.mxu1 %v1892_v0 }
 0x63d   : > { %1740 = vmatpush3.bf16.msra.mxu1 %v1842_v3 }
 0x63e   : > { %1741 = vmatprep.subr.bf16.mxu1 %v1892_v0 }
 0x641   : > { %1742 = vmatpush3.bf16.msra.mxu1 %v1843_v12 }
 0x642   : > { %1743 = vmatprep.subr.bf16.mxu1 %v1892_v0 }
 0x645   : > { %1744 = vmatpush3.bf16.msra.mxu1 %v1844_v13 }
 0x6fb   : > { %v1068_v5 = vpop.f32.mrb[12].mxu1 }
 0x6fc   : > { %v1069_v6 = vadd.f32 %v1449_v4, %v1068_v5  ;;  %v1707_v7 = vpop.f32.mrb[13].mxu1 }
 0x6fd   : > { %v1071_v8 = vpop.f32.mrb[14].mxu1 }
 0x6fe   : > { %v1074_v9 = vmax.f32 %v1069_v6, 0.0  ;;  %v1708_v10 = vpop.f32.mrb[15].mxu1 }
 0x700   : > { %v1075_v11 = vpack.c.bf16 %v1074_v9, %v1074_v9 }
 0x702   : > { %1726 = vmatmul.mubr.bf16.vlgmr.msra.gmra.mrb[16].mxu0 %v1075_v11 }
 0x7d5   : > { %v1183_v15 = vpop.f32.mrb[16].mxu0 }
 0x7d6   : > { %v1184_v16 = vadd.f32 %v1459_v14, %v1183_v15  ;;  %v1727_v17 = vpop.f32.mrb[17].mxu0 }
 0x7d7   : > { %v1186_v18 = vpop.f32.mrb[18].mxu0 }
 0x7d8   : > { %v1189_v19 = vmax.f32 %v1184_v16, 0.0  ;;  %v1728_v20 = vpop.f32.mrb[19].mxu0 }
 0x7da   : > { %v1190_v21 = vpack.c.bf16 %v1189_v19, %v1189_v19 }
 0x7dc   : > { %1746 = vmatmul.mubr.bf16.vlgmr.msra.gmra.mrb[16].mxu1 %v1190_v21 }
 0x8af   : > { %v1298_v0 = vpop.f32.mrb[16].mxu1 }
 0x8b0   : > { %v1299_v23 = vadd.f32 %v1469_v22, %v1298_v0  ;;  %v1747_v24 = vpop.f32.mrb[17].mxu1 }
 0x8b1   : > { %v1301_v25 = vpop.f32.mrb[18].mxu1 }
 0x8b2   : > { %v1304_v26 = vsub.f32 0.0, %v1299_v23  ;;  %v1748_v27 = vpop.f32.mrb[19].mxu1 }
 0x8b4   : > { %v1305_v28 = vmul.f32 1.442695, %v1304_v26 }
 0x8b6   : > { %1845 = vpow2.f32 %v1305_v28 }
 0x8c0   : > { %v1846_v29 = vpop.eup %1845 }
 0x8c1   : > { %v1307_v30 = vadd.f32 1.0, %v1846_v29 }
 0x8c3   : > { %1847 = vrcp.f32 %v1307_v30 }
 0x8cd   : > { %v1848_v31 = vpop.eup %1847 }
 0x8ce   : > { %1310 = vst.msk [vmem:[%s207_s12] sm:$0xff] %vm1309_vm2, %v1848_v31 }
 0x8cf PF: > { %s15_s15 = sadd.s32 1, %s1887_s15  }
 0x8d0   : > { %p12_p3 = scmp.ge.s32.totalorder %s15_s15, 6  }
 0x8d2   :  { %14 = sbr.rel (!%p12_p3) target bundleno = 1 (0x1), region = 88 }
 0x8d9   :  { %1330 = vsyncpa [#allocation3], 1 }
 0x8da   :  { %1332 = vsyncpa [#allocation3 + $0x1], 1 }

</bundles_post_ra>
